<compile_context>
chip_gen: v7x
topology: tpu7x:2x2x1
jax: 0.10.0
libtpu: 0.0.40
codegen_flags: <defaults>
</compile_context>

<pallas_src>
import functools

import jax
import jax.numpy as jnp
from jax.experimental import pallas as pl
from jax.experimental.pallas import tpu as pltpu

_LANE = 128


def _extension_kernel(x_ref, w_ref, b_ref, o_ref, acc_ref, *, inv_seq_len):
    # x_ref:   (TB, TS, H)  bf16  streamed block (double-buffered by Pallas)
    # w_ref:   (H, Lpad)    bf16  resident (constant index_map)
    # b_ref:   (1, Lpad)    f32   resident (constant index_map)
    # o_ref:   (TB, Lpad)   f32   resident across the seq (arbitrary) axis
    # acc_ref: (TB, H)      f32   pooled-sum accumulator (VMEM scratch)
    si = pl.program_id(1)

    @pl.when(si == 0)
    def _init():
        acc_ref[...] = jnp.zeros_like(acc_ref)

    # Streaming bf16 -> f32 convert-and-accumulate seq reduction on the VPU;
    # the bf16 activation tile is never materialized as a full f32 copy.
    # TODO(synk): on v7x (~3.2 TB/s/TC) consider moving this reduce onto the
    # idle MXU (ones-vector contraction) if VALU becomes a secondary limiter.
    acc_ref[...] += jnp.sum(x_ref[...], axis=1, dtype=jnp.float32)

    @pl.when(si == pl.num_programs(1) - 1)
    def _finalize():
        # Deliberate precision trade-off: the f32 pooled sum is re-cast to bf16
        # so the (TB,H)x(H,Lpad) head matmul runs as a bf16 MXU op with f32
        # accumulation (~2^-8 rel. error on pooled features).
        pooled = acc_ref[...].astype(w_ref.dtype)
        logits = jnp.dot(pooled, w_ref[...],
                         preferred_element_type=jnp.float32)
        # Fold the 1/S mean scale into the tiny (TB, Lpad) tile + f32 bias.
        # Output ref is f32 -> this is the `.to(torch.float32)` of Extension.
        o_ref[...] = logits * inv_seq_len + b_ref[...]


def _vmem_capacity_bytes():
    """Best-effort physical-VMEM query; conservative (v7x-sized) fallback."""
    try:
        info = pltpu.get_tpu_info()
        cap = int(getattr(info, "vmem_capacity_bytes", 0) or 0)
        if cap > 0:
            return cap
    except Exception:
        pass
    return 64 << 20


def _choose_tiles(batch, seq, hidden, target_x_bytes):
    """Pick (TB, TS) for the bf16 activation block.

    TB: divisor of B, multiple of 8 when possible; prefers >=2 batch tiles so
        the 'parallel' axis shards across both TensorCores on v7x.
    TS: divisor of S that is a multiple of 16 (bf16 sublane packing) or S
        itself; grows to fill `target_x_bytes` given TB (growth biased toward
        the seq axis -> longer contiguous DMA segments).  If TB is forced
        large (tiny/odd B), TS shrinks so the block stays near the budget.
    """
    div8 = [d for d in range(8, batch + 1, 8) if batch % d == 0]
    two_tile = [d for d in div8 if d <= batch // 2]
    if two_tile:
        tb = max([d for d in two_tile if d <= 64] or [min(two_tile)])
    elif div8:
        tb = min(div8)
    else:
        tb = batch  # B < 8 or odd: single full-batch tile (still a legal block)

    cands = [d for d in range(1, seq + 1)
             if seq % d == 0 and (d % 16 == 0 or d == seq)]
    fitting = [d for d in cands if tb * d * hidden * 2 <= target_x_bytes]
    ts = max(fitting) if fitting else min(cands)
    return tb, ts


def extension_forward(params, **kwargs):
    """Mirrors Extension.forward: pops `labels`, runs model, returns f32 logits."""
    kwargs.pop("labels", None)                   # labels are ignored, as in the module
    x = kwargs["inputs_embeds"]                  # (B, S, H) bf16 hidden states
    w_p = params["classifier_w"]                 # (H, Lpad) bf16, pre-padded at init
    b_p = params["classifier_b"]                 # (1, Lpad) f32,  pre-padded at init
    num_labels = params["num_labels"]

    B, S, H = x.shape
    l_pad = w_p.shape[1]

    vmem_cap = _vmem_capacity_bytes()
    # HBM-bound kernel -> big streaming blocks: ~8 MiB on 64 MiB-VMEM chips
    # (v7x), ~14 MiB on 128 MiB-VMEM chips (v5e/v6e).
    target_x_bytes = (14 << 20) if vmem_cap >= (96 << 20) else (8 << 20)
    tb, ts = _choose_tiles(B, S, H, target_x_bytes)
    grid = (B // tb, S // ts)

    # VMEM accounting with the actual pipeline buffers:
    #   x double-buffered; w/b/out double-buffered (default; they are tiny, we
    #   deliberately skip pl.Buffered(1) to keep lowering simple); acc single.
    x_blk = tb * ts * H * 2
    w_bytes = H * l_pad * 2
    b_bytes = l_pad * 4
    o_bytes = tb * l_pad * 4
    acc_bytes = tb * H * 4
    needed = 2 * x_blk + 2 * (w_bytes + b_bytes + o_bytes) + acc_bytes
    vmem_limit = int(min(int(vmem_cap * 0.85),
                         max(32 << 20, needed + (4 << 20))))

    out_padded = pl.pallas_call(
        functools.partial(_extension_kernel, inv_seq_len=1.0 / S),
        out_shape=jax.ShapeDtypeStruct((B, l_pad), jnp.float32),
        grid_spec=pltpu.PrefetchScalarGridSpec(
            num_scalar_prefetch=0,
            grid=grid,
            in_specs=[
                pl.BlockSpec((tb, ts, H), lambda bi, si: (bi, si, 0)),
                pl.BlockSpec((H, l_pad), lambda bi, si: (0, 0)),
                pl.BlockSpec((1, l_pad), lambda bi, si: (0, 0)),
            ],
            out_specs=pl.BlockSpec((tb, l_pad), lambda bi, si: (bi, 0)),
            scratch_shapes=[pltpu.VMEM((tb, H), jnp.float32)],
        ),
        compiler_params=pltpu.CompilerParams(
            dimension_semantics=("parallel", "arbitrary"),
            vmem_limit_bytes=vmem_limit,
        ),
    )(x, w_p, b_p)

    return out_padded[:, :num_labels]


def _pad_head(w, b):
    """Lane-dense padding of the classifier head (called once at init)."""
    h, l = w.shape
    l_pad = max(_LANE, ((l + _LANE - 1) // _LANE) * _LANE)
    w_p = jnp.zeros((h, l_pad), w.dtype).at[:, :l].set(w)
    b_p = jnp.zeros((1, l_pad), jnp.float32).at[:, :l].set(b.astype(jnp.float32))
    return w_p, b_p


def init_params(hidden=32, num_labels=2):
    # Deterministic synthetic parameters (no checkpoint load).
    k_w, _ = jax.random.split(jax.random.PRNGKey(0))
    w = (jax.random.normal(k_w, (hidden, num_labels), jnp.float32) * 0.02).astype(jnp.bfloat16)
    b = jnp.zeros((1, num_labels), jnp.float32)
    # Padding hoisted out of the forward pass (done once here).
    w_p, b_p = _pad_head(w, b)
    return {"classifier_w": w_p, "classifier_b": b_p, "num_labels": num_labels,
            "classifier_w_raw": w, "classifier_b_raw": b}


if __name__ == "__main__":
    batch, seq, hidden, num_labels = 2, 8, 32, 2

    key = jax.random.PRNGKey(0)
    k_x, k_lbl = jax.random.split(key)
    inputs_embeds = jax.random.normal(k_x, (batch, seq, hidden), jnp.float32).astype(jnp.bfloat16)
    labels = jax.random.randint(k_lbl, (batch,), 0, num_labels)   # dropped by forward()

    params = init_params(hidden, num_labels)

    logits = extension_forward(params, inputs_embeds=inputs_embeds, labels=labels)
    logits = jax.block_until_ready(logits)

    # Pure-JAX reference of the synthetic model + f32 cast.
    pooled_ref = jnp.mean(inputs_embeds.astype(jnp.float32), axis=1)
    ref = (pooled_ref @ params["classifier_w_raw"].astype(jnp.float32)
           + params["classifier_b_raw"]).astype(jnp.float32)

    assert logits.dtype == jnp.float32
    assert logits.shape == (batch, num_labels)
    assert jnp.allclose(logits, ref, atol=1e-2, rtol=1e-2)

    print("KERNEL_OK")
</pallas_src>

<mosaic_0001>
module attributes {stable_mosaic.version = 11 : i64} {
  func.func @_extension_kernel(%arg0: i32, %arg1: i32, %arg2: memref<2x8x32xbf16, #tpu.memory_space<vmem>>, %arg3: memref<32x128xbf16, #tpu.memory_space<vmem>>, %arg4: memref<1x128xf32, #tpu.memory_space<vmem>>, %arg5: memref<2x128xf32, #tpu.memory_space<vmem>>, %arg6: memref<2x32xf32, #tpu.memory_space<vmem>>) attributes {dimension_semantics = [#tpu.dimension_semantics<parallel>, #tpu.dimension_semantics<arbitrary>], iteration_bounds = array<i64: 1, 1>, scalar_prefetch = 0 : i64, scratch_operands = 1 : i64, tpu.core_type = #tpu.core_type<tc>, window_params = [{transform_indices = @transform_0, window_bounds = array<i64: 2, 8, 32>}, {pipeline_mode = #tpu.pipeline_mode<synchronous>, transform_indices = @transform_1, window_bounds = array<i64: 32, 128>}, {pipeline_mode = #tpu.pipeline_mode<synchronous>, transform_indices = @transform_2, window_bounds = array<i64: 1, 128>}, {transform_indices = @transform_3, window_bounds = array<i64: 2, 128>}]} {
    %c0_i32 = arith.constant 0 : i32
    %0 = arith.cmpi eq, %arg1, %c0_i32 : i32
    %1 = arith.extui %0 : i1 to i32
    %c0_i32_0 = arith.constant 0 : i32
    %2 = arith.cmpi ne, %1, %c0_i32_0 : i32
    scf.if %2 {
      %cst_9 = arith.constant 0.000000e+00 : f32
      %12 = vector.broadcast %cst_9 : f32 to vector<2x32xf32>
      %c0_10 = arith.constant 0 : index
      %c0_11 = arith.constant 0 : index
      %13 = vector.load %arg6[%c0_10, %c0_11] : memref<2x32xf32, #tpu.memory_space<vmem>>, vector<2x32xf32>
      tpu.vector_store %arg6[%c0_10, %c0_11], %12 {strides = array<i32>} : memref<2x32xf32, #tpu.memory_space<vmem>>, vector<2x32xf32>,
    } else {
    }
    %c0 = arith.constant 0 : index
    %c0_1 = arith.constant 0 : index
    %3 = vector.load %arg6[%c0, %c0_1] : memref<2x32xf32, #tpu.memory_space<vmem>>, vector<2x32xf32>
    %c0_2 = arith.constant 0 : index
    %c0_3 = arith.constant 0 : index
    %c0_4 = arith.constant 0 : index
    %4 = vector.load %arg2[%c0_2, %c0_3, %c0_4] : memref<2x8x32xbf16, #tpu.memory_space<vmem>>, vector<2x8x32xbf16>
    %5 = arith.extf %4 : vector<2x8x32xbf16> to vector<2x8x32xf32>
    %cst = arith.constant dense<0.000000e+00> : vector<2x32xf32>
    %6 = vector.multi_reduction <add>, %5, %cst [1] : vector<2x8x32xf32> to vector<2x32xf32>
    %7 = arith.addf %3, %6 : vector<2x32xf32>
    %c0_5 = arith.constant 0 : index
    %c0_6 = arith.constant 0 : index
    %8 = vector.load %arg6[%c0_5, %c0_6] : memref<2x32xf32, #tpu.memory_space<vmem>>, vector<2x32xf32>
    tpu.vector_store %arg6[%c0_5, %c0_6], %7 {strides = array<i32>} : memref<2x32xf32, #tpu.memory_space<vmem>>, vector<2x32xf32>,
    %c0_i32_7 = arith.constant 0 : i32
    %9 = arith.cmpi eq, %arg1, %c0_i32_7 : i32
    %10 = arith.extui %9 : i1 to i32
    %c0_i32_8 = arith.constant 0 : i32
    %11 = arith.cmpi ne, %10, %c0_i32_8 : i32
    scf.if %11 {
      %c0_9 = arith.constant 0 : index
      %c0_10 = arith.constant 0 : index
      %12 = vector.load %arg6[%c0_9, %c0_10] : memref<2x32xf32, #tpu.memory_space<vmem>>, vector<2x32xf32>
      %13 = arith.truncf %12 : vector<2x32xf32> to vector<2x32xbf16>
      %c0_11 = arith.constant 0 : index
      %c0_12 = arith.constant 0 : index
      %14 = vector.load %arg3[%c0_11, %c0_12] : memref<32x128xbf16, #tpu.memory_space<vmem>>, vector<32x128xbf16>
      %cst_13 = arith.constant dense<0.000000e+00> : vector<2x128xf32>
      %15 = tpu.matmul %13, %14, %cst_13 {dimension_numbers = #tpu.dot_dimension_numbers<[1], [0], [0], [1], [0, 0, 1, 1], [], []>} : vector<2x32xbf16>, vector<32x128xbf16>, vector<2x128xf32> -> vector<2x128xf32>
      %cst_14 = arith.constant 1.250000e-01 : f32
      %16 = vector.broadcast %cst_14 : f32 to vector<2x128xf32>
      %17 = arith.mulf %15, %16 : vector<2x128xf32>
      %c0_15 = arith.constant 0 : index
      %c0_16 = arith.constant 0 : index
      %18 = vector.load %arg4[%c0_15, %c0_16] : memref<1x128xf32, #tpu.memory_space<vmem>>, vector<1x128xf32>
      %19 = vector.broadcast %18 : vector<1x128xf32> to vector<2x128xf32>
      %20 = arith.addf %17, %19 : vector<2x128xf32>
      %c0_17 = arith.constant 0 : index
      %c0_18 = arith.constant 0 : index
      %21 = vector.load %arg5[%c0_17, %c0_18] : memref<2x128xf32, #tpu.memory_space<vmem>>, vector<2x128xf32>
      tpu.vector_store %arg5[%c0_17, %c0_18], %20 {strides = array<i32>} : memref<2x128xf32, #tpu.memory_space<vmem>>, vector<2x128xf32>,
    } else {
    }
    return
  }
  func.func @transform_0(%arg0: i32, %arg1: i32) -> (i32, i32, i32) {
    %c0_i32 = arith.constant 0 : i32
    %c0_i32_0 = arith.constant 0 : i32
    return %arg0, %arg1, %c0_i32 : i32, i32, i32
  }
  func.func @transform_1(%arg0: i32, %arg1: i32) -> (i32, i32) {
    %c0_i32 = arith.constant 0 : i32
    %c0_i32_0 = arith.constant 0 : i32
    %c0_i32_1 = arith.constant 0 : i32
    return %c0_i32, %c0_i32_0 : i32, i32
  }
  func.func @transform_2(%arg0: i32, %arg1: i32) -> (i32, i32) {
    %c0_i32 = arith.constant 0 : i32
    %c0_i32_0 = arith.constant 0 : i32
    %c0_i32_1 = arith.constant 0 : i32
    return %c0_i32, %c0_i32_0 : i32, i32
  }
  func.func @transform_3(%arg0: i32, %arg1: i32) -> (i32, i32) {
    %c0_i32 = arith.constant 0 : i32
    %c0_i32_0 = arith.constant 0 : i32
    return %arg0, %c0_i32 : i32, i32
  }
}

</mosaic_0001>

<bundles_post_ra>
// kernel: tpu_custom_call.1
= control target key start
LH: loop header
LB: loop body
LE: loop exit
PB: predicated region body
PF: predicated region fallthrough
CT: control target
= control target key end

     0   :  { %8 = vsyncpa [#allocation4], 0  ;;  %s339_s0 = inlined_call_operand.hbm [shape: bf16[2,8,32], index: 0, kind: input, shape index: {}]   ;;  %s340_s1 = inlined_call_operand.hbm [shape: bf16[32,128], index: 1, kind: input, shape index: {}]   ;;  %s341_s2 = inlined_call_operand.vmem [shape: f32[1,128], index: 2, kind: input, shape index: {}]   ;;  %s342_s3 = inlined_call_operand.hbm [shape: f32[2,128], index: 3, kind: output, shape index: {}]  }
   0x1   :  { %9 = vsyncpa [#allocation7], 0 }
   0x2   :  { %10 = vsyncpa [#allocation5], 0  ;;  %s268_s12 = smov [#allocation3]   ;;  %s196_s16 = scalar_lea.hbm %s339_s0, 128 }
   0x3   :  { %s16_s13 = sshll.u32 %s268_s12, 4  ;;  %p197_p0 = scmp.ne.s32.totalorder %s339_s0, %s196_s16  ;;  %s17_s13 = int_to_ptr.vmem [resolvable:$true] %s16_s13 }
   0x4   :  { %p200_p1 = scmp.lt.u32.totalorder %s196_s16, %s339_s0 }
   0x6   :  { %p202_p2 = pnand %p200_p1, %p197_p0 }
   0x8   :  { %205 = shalt.err (!%p202_p2)
}
   0x9   :  { %s206_s21 = scalar_lea.vmem %s17_s13, 128  ;;  %p211_p4 = scmp.lt.s32.totalorder %s17_s13, %s17_s13 }
   0xa   :  { %p207_p3 = scmp.ne.s32.totalorder %s17_s13, %s206_s21  ;;  %p212_p5 = scmp.lt.s32.totalorder %s206_s21, %s206_s21 }
   0xc   :  { %p213_p6 = por %p212_p5, %p211_p4 }
   0xe   :  { %p214_p7 = pnand %p213_p6, %p207_p3 }
  0x10   :  { %217 = shalt.err (!%p214_p7)
}
  0x11   :  { %s269_s22 = smov 64   ;;  %s270_s23 = smov 4  }
  0x12   :  { %22 = dma.hbm_to_vmem [thread:$0]  %s339_s0, 128, %s17_s13, [#allocation4], %s269_s22, %s269_s22, %s270_s23  }
  0x13   :  { %s271_s26 = smov [#allocation6]   ;;  %s218_s30 = scalar_lea.hbm %s340_s1, 256 }
  0x14   :  { %s28_s27 = sshll.u32 %s271_s26, 4  ;;  %p219_p8 = scmp.ne.s32.totalorder %s340_s1, %s218_s30  ;;  %s29_s27 = int_to_ptr.vmem [resolvable:$true] %s28_s27 }
  0x15   :  { %p222_p9 = scmp.lt.u32.totalorder %s218_s30, %s340_s1 }
  0x17   :  { %p224_p10 = pnand %p222_p9, %p219_p8 }
  0x19   :  { %227 = shalt.err (!%p224_p10)
}
  0x1a   :  { %s228_s8 = scalar_lea.vmem %s29_s27, 256  ;;  %p233_p12 = scmp.lt.s32.totalorder %s29_s27, %s29_s27 }
  0x1b   :  { %p229_p11 = scmp.ne.s32.totalorder %s29_s27, %s228_s8  ;;  %p234_p13 = scmp.lt.s32.totalorder %s228_s8, %s228_s8 }
  0x1d   :  { %p235_p0 = por %p234_p13, %p233_p12 }
  0x1f   :  { %p236_p1 = pnand %p235_p0, %p229_p11 }
  0x21   :  { %239 = shalt.err (!%p236_p1)
}
  0x22   :  { %34 = dma.hbm_to_vmem [thread:$0]  %s340_s1, 256, %s29_s27, [#allocation7], %s269_s22, %s269_s22, %s270_s23  }
  0x23   :  { %262 = dma.done.wait [#allocation4], 128  }
  0x24   :  { %263 = vsyncadd [#allocation4], 4294967168 }
  0x25   :  { %264 = dma.done.wait [#allocation7], 256  }
  0x26   :  { %265 = vsyncadd [#allocation7], 4294967040  ;;  %vm48_vm0 = vcmask 254976   ;;  %v272_v0 = vmov 0.0   ;;  %vm273_vm1 = vmmov 0   ;;  %v194_v1 = vld [vmem:[#allocation6] sm:$0xff]  }
  0x27   :  { %49 = vst.msk [vmem:[#allocation2] sm:$0x3] %vm48_vm0, %v272_v0  ;;  %179 = vmatprep.subr.bf16.mxu0 %v272_v0  ;;  %183 = vmatprep.mubr.msk.bf16.mxu0 %vm273_vm1, %v272_v0  ;;  %v195_v2 = vld [vmem:[#allocation6 + $0x8] sm:$0xff]   ;;  %v173_v3 = vld [vmem:[#allocation3] sm:$0xff]   ;;  %vm55_vm2 = vcmask 261120   ;;  %vm72_vm3 = vcmask 1041409  }
  0x28   :  { %180 = vmatpush3.bf16.msra.mxu0 %v194_v1  ;;  %v174_v4 = vunpack.c.l.bf16 %v173_v3  ;;  %v175_v5 = vunpack.c.h.bf16 %v173_v3  ;;  %v171_v26 = vld [vmem:[%s341_s2] ss:$0 sm:$0xff]  ;;  %s274_s11 = smov [#allocation8]  }
  0x29   :  { %181 = vmatprep.subr.bf16.mxu0 %v272_v0  ;;  %s158_s12 = sshll.u32 %s274_s11, 4  ;;  %s159_s12 = int_to_ptr.vmem [resolvable:$true] %s158_s12 }
  0x2a   :  { %v56_v6 = vsel %vm55_vm2, %v174_v4, 0.0  ;;  %v63_v7 = vsel %vm55_vm2, %v175_v5, 0.0  ;;  %s240_s13 = scalar_lea.vmem %s159_s12, 32  ;;  %p245_p3 = scmp.lt.s32.totalorder %s159_s12, %s159_s12 }
  0x2b   :  { %v57_v8 = vrot.slane %v56_v6, 4  ;;  %v64_v9 = vrot.slane %v63_v7, 4  ;;  %p241_p2 = scmp.ne.s32.totalorder %s159_s12, %s240_s13  ;;  %p246_p4 = scmp.lt.s32.totalorder %s240_s13, %s240_s13 }
  0x2c   :  { %182 = vmatpush3.bf16.msra.mxu0 %v195_v2 }
  0x2d   :  { %v58_v10 = vadd.f32 %v57_v8, %v56_v6  ;;  %v65_v11 = vadd.f32 %v64_v9, %v63_v7  ;;  %p247_p5 = por %p246_p4, %p245_p3 }
  0x2e   :  { %v50_v18 = vld [vmem:[#allocation2] sm:$0x3] }
  0x2f   :  { %v59_v12 = vrot.slane %v58_v10, 2  ;;  %v66_v13 = vrot.slane %v65_v11, 2  ;;  %p248_p6 = pnand %p247_p5, %p241_p2 }
  0x31   :  { %v60_v14 = vadd.f32 %v59_v12, %v58_v10  ;;  %v67_v15 = vadd.f32 %v66_v13, %v65_v11 }
  0x33   :  { %v61_v16 = vrot.slane %v60_v14, 1  ;;  %v68_v17 = vrot.slane %v67_v15, 1 }
  0x35   :  { %v62_v19 = vadd.f32 %v61_v16, %v60_v14  ;;  %v69_v20 = vadd.f32 %v68_v17, %v67_v15 }
  0x37   :  { %v73_v21 = vsel %vm72_vm3, %v69_v20, %v62_v19 }
  0x38   :  { %v75_v22 = vadd.f32 %v73_v21, %v50_v18 }
  0x3a   :  { %77 = vst.msk [vmem:[#allocation2] sm:$0x3] %vm48_vm0, %v75_v22 }
  0x41   :  { %v81_v23 = vld [vmem:[#allocation2] sm:$0x3] }
  0x42   :  { %v82_v24 = vpack.c.bf16 %v81_v23, %v81_v23 }
  0x44   :  { %184 = vmatmul.mubr.msk.bf16.vlgmr.msra.gmra.mrb[0].mxu0 %vm55_vm2, %v82_v24 }
 0x117   :  { %v136_v25 = vpop.f32.mrb[0].mxu0 }
 0x118   :  { %v142_v27 = vmul.f32 0.125, %v136_v25  ;;  %v185_v28 = vpop.f32.mrb[1].mxu0 }
 0x119   :  { %v139_v29 = vpop.f32.mrb[2].mxu0 }
 0x11a   :  { %v150_v30 = vadd.f32 %v171_v26, %v142_v27  ;;  %v186_v31 = vpop.f32.mrb[3].mxu0 }
 0x11c   :  { %151 = vst [vmem:[#allocation8] sm:$0x3] %v150_v30 }
 0x11d   :  { %251 = shalt.err (!%p248_p6)
}
 0x11e   :  { %s252_s2 = scalar_lea.hbm %s342_s3, 32 }
 0x11f   :  { %p253_p7 = scmp.ne.s32.totalorder %s342_s3, %s252_s2  ;;  %p256_p8 = scmp.lt.u32.totalorder %s252_s2, %s342_s3 }
 0x121   :  { %p258_p9 = pnand %p256_p8, %p253_p7 }
 0x123   :  { %261 = shalt.err (!%p258_p9)
}
 0x124   :  { %161 = dma.vmem_to_hbm [thread:$0]  %s159_s12, 32, %s342_s3, [#allocation5]  }
 0x125   :  { %266 = dma.done.wait [#allocation5], 32  }
 0x126   :  { %267 = vsyncadd [#allocation5], 4294967264 }
 0x127   :  { %165 = vsyncpa [#allocation4], 1 }
 0x128   :  { %166 = vsyncpa [#allocation7], 1 }
 0x129   :  { %167 = vsyncpa [#allocation5], 1 }

</bundles_post_ra>
